<compile_context>
chip_gen: v5e
topology: v5e:2x2
jax: 0.10.0
libtpu: 0.0.40
codegen_flags: <defaults>
</compile_context>

<pallas_src>
import jax
import jax.numpy as jnp
from jax.experimental import pallas as pl
from jax.experimental.pallas import tpu as pltpu


def _path_attention_kernel(x_ref, w1_ref, b1_ref, w2_ref, o_ref):
    x = x_ref[...]                                   # (TB, L, E) f32
    TB, L, E = x.shape
    H = w1_ref.shape[1]

    # --- Scoring MLP -------------------------------------------------------
    # Fold the path-block into one MXU-friendly matmul: (TB*L, E) @ (E, H).
    x2 = x.reshape(TB * L, E)
    h = jnp.dot(x2, w1_ref[...], preferred_element_type=jnp.float32) + b1_ref[...]   # (TB*L, H)
    h = jnp.maximum(h, 0.0)

    # H -> 1 projection on the VPU/XLU: broadcast-mul with the (1, H) weight row and
    # lane-reduce.  The scalar bias b2 is omitted: softmax is shift-invariant, so adding
    # the same constant to every node score leaves the weights (and output) unchanged.
    h3 = h.reshape(TB, L, H)                                                          # (TB, L, H)
    atts = jnp.sum(h3 * w2_ref[...], axis=-1, keepdims=True)                          # (TB, L, 1)

    # --- Softmax over the path/node axis (dim=0 per path), numerically stable ---
    m = jnp.max(atts, axis=1, keepdims=True)                                          # (TB, 1, 1)
    e = jnp.exp(atts - m)                                                             # (TB, L, 1)
    denom = jnp.sum(e, axis=1, keepdims=True)                                         # (TB, 1, 1)
    weights = e * pl.reciprocal(denom, approx=True)                                   # (TB, L, 1)

    # --- Attention-weighted pooling over path nodes -> sublane-dense (TB, E) output ---
    o_ref[...] = jnp.sum(weights * x, axis=1)                                         # (TB, E)


def path_attention_forward_batched(paths, w1, b1, w2, b2, *, block_b=8):
    """paths: (B, L, E) float32. Returns (B, E) float32 pooled features.

    `b2` is accepted for API fidelity with the PyTorch module but is not needed:
    a scalar bias before a softmax does not change the softmax output.
    """
    del b2  # softmax shift-invariance: b2 has no effect on the forward output.
    B, L, E = paths.shape
    H = w1.shape[1]

    # Pad the batch up to a multiple of the per-step path-block size (zero paths pool to 0
    # and are sliced off; no NaN risk since softmax of constant scores is uniform).
    Bp = ((B + block_b - 1) // block_b) * block_b
    if Bp != B:
        paths = jnp.concatenate(
            [paths, jnp.zeros((Bp - B, L, E), paths.dtype)], axis=0)

    out = pl.pallas_call(
        _path_attention_kernel,
        out_shape=jax.ShapeDtypeStruct((Bp, E), jnp.float32),
        grid=(Bp // block_b,),
        in_specs=[
            pl.BlockSpec((block_b, L, E), lambda i: (i, 0, 0)),          # path block
            pl.BlockSpec((E, H), lambda i: (0, 0)),                      # W1 (resident)
            pl.BlockSpec((1, H), lambda i: (0, 0)),                      # b1 (resident)
            pl.BlockSpec((1, H), lambda i: (0, 0)),                      # W2 as a row (resident)
        ],
        out_specs=pl.BlockSpec((block_b, E), lambda i: (i, 0)),
        compiler_params=pltpu.CompilerParams(
            dimension_semantics=("parallel",)),                          # megacore-shard batch axis
    )(
        paths,
        w1,
        b1.reshape(1, H),
        w2.reshape(1, H),
    )
    return out[:B]


def path_attention_forward(path_nodes, w1, b1, w2, b2, *, block_b=8):
    """Module-equivalent single-path forward: (L, E) -> (E,)."""
    paths = jnp.broadcast_to(path_nodes[None], (block_b,) + path_nodes.shape)
    return path_attention_forward_batched(paths, w1, b1, w2, b2, block_b=block_b)[0]


def _reference_single(path_nodes, w1, b1, w2, b2):
    atts = jnp.maximum(path_nodes @ w1 + b1, 0.0) @ w2 + b2      # (L, 1)
    weights = jax.nn.softmax(atts, axis=0)
    return jnp.sum(weights * path_nodes, axis=0)                 # (E,)


if __name__ == "__main__":
    # Shapes consistent with the module: path length L = 8, emb_dim = 32, att_hidden_dim = 32.
    # Batched demo with B = 16 paths, processed block_b = 8 paths per grid step (grid = (2,)).
    B, L, E, H = 16, 8, 32, 32

    key = jax.random.PRNGKey(0)
    k_x, k_w1, k_b1, k_w2, k_b2 = jax.random.split(key, 5)

    paths = jax.random.normal(k_x, (B, L, E), dtype=jnp.float32)

    # Deterministic PyTorch-Linear-style init: U(-1/sqrt(fan_in), +1/sqrt(fan_in)).
    lim1 = 1.0 / jnp.sqrt(jnp.float32(E))
    lim2 = 1.0 / jnp.sqrt(jnp.float32(H))
    w1 = jax.random.uniform(k_w1, (E, H), jnp.float32, -lim1, lim1)
    b1 = jax.random.uniform(k_b1, (H,), jnp.float32, -lim1, lim1)
    w2 = jax.random.uniform(k_w2, (H, 1), jnp.float32, -lim2, lim2)
    b2 = jax.random.uniform(k_b2, (1,), jnp.float32, -lim2, lim2)

    # Batched kernel vs. per-path reference.
    out_b = jax.block_until_ready(
        path_attention_forward_batched(paths, w1, b1, w2, b2, block_b=8))
    ref_b = jax.vmap(lambda p: _reference_single(p, w1, b1, w2, b2))(paths)
    assert out_b.shape == (B, E)
    # approx=True reciprocal in the softmax -> slightly looser tolerance than exact f32.
    assert jnp.allclose(out_b, ref_b, atol=2e-3, rtol=2e-3), (out_b, ref_b)

    # Single-path (module-equivalent) wrapper.
    out_1 = jax.block_until_ready(path_attention_forward(paths[0], w1, b1, w2, b2))
    ref_1 = _reference_single(paths[0], w1, b1, w2, b2)
    assert out_1.shape == (E,)
    assert jnp.allclose(out_1, ref_1, atol=2e-3, rtol=2e-3), (out_1, ref_1)

    print("KERNEL_OK")
</pallas_src>

<mosaic_0001>
module attributes {stable_mosaic.version = 11 : i64} {
  func.func @_path_attention_kernel(%arg0: i32, %arg1: memref<8x8x32xf32, #tpu.memory_space<vmem>>, %arg2: memref<32x32xf32, #tpu.memory_space<vmem>>, %arg3: memref<1x32xf32, #tpu.memory_space<vmem>>, %arg4: memref<1x32xf32, #tpu.memory_space<vmem>>, %arg5: memref<8x32xf32, #tpu.memory_space<vmem>>) attributes {dimension_semantics = [#tpu.dimension_semantics<parallel>], iteration_bounds = array<i64: 2>, scalar_prefetch = 0 : i64, scratch_operands = 0 : i64, tpu.core_type = #tpu.core_type<tc>, window_params = [{transform_indices = @transform_0, window_bounds = array<i64: 8, 8, 32>}, {pipeline_mode = #tpu.pipeline_mode<synchronous>, transform_indices = @transform_1, window_bounds = array<i64: 32, 32>}, {pipeline_mode = #tpu.pipeline_mode<synchronous>, transform_indices = @transform_2, window_bounds = array<i64: 1, 32>}, {pipeline_mode = #tpu.pipeline_mode<synchronous>, transform_indices = @transform_3, window_bounds = array<i64: 1, 32>}, {transform_indices = @transform_4, window_bounds = array<i64: 8, 32>}]} {
    %c0 = arith.constant 0 : index
    %c0_0 = arith.constant 0 : index
    %c0_1 = arith.constant 0 : index
    %0 = vector.load %arg1[%c0, %c0_0, %c0_1] : memref<8x8x32xf32, #tpu.memory_space<vmem>>, vector<8x8x32xf32>
    %1 = vector.shape_cast %0 : vector<8x8x32xf32> to vector<64x32xf32>
    %c0_2 = arith.constant 0 : index
    %c0_3 = arith.constant 0 : index
    %2 = vector.load %arg2[%c0_2, %c0_3] : memref<32x32xf32, #tpu.memory_space<vmem>>, vector<32x32xf32>
    %cst = arith.constant dense<0.000000e+00> : vector<64x32xf32>
    %3 = tpu.matmul %1, %2, %cst {dimension_numbers = #tpu.dot_dimension_numbers<[1], [0], [0], [1], [0, 0, 1, 1], [], []>} : vector<64x32xf32>, vector<32x32xf32>, vector<64x32xf32> -> vector<64x32xf32>
    %c0_4 = arith.constant 0 : index
    %c0_5 = arith.constant 0 : index
    %4 = vector.load %arg3[%c0_4, %c0_5] : memref<1x32xf32, #tpu.memory_space<vmem>>, vector<1x32xf32>
    %5 = vector.broadcast %4 : vector<1x32xf32> to vector<64x32xf32>
    %6 = arith.addf %3, %5 : vector<64x32xf32>
    %cst_6 = arith.constant 0.000000e+00 : f32
    %7 = vector.broadcast %cst_6 : f32 to vector<64x32xf32>
    %8 = arith.maximumf %6, %7 : vector<64x32xf32>
    %9 = vector.shape_cast %8 : vector<64x32xf32> to vector<8x8x32xf32>
    %c0_7 = arith.constant 0 : index
    %c0_8 = arith.constant 0 : index
    %10 = vector.load %arg4[%c0_7, %c0_8] : memref<1x32xf32, #tpu.memory_space<vmem>>, vector<1x32xf32>
    %11 = vector.shape_cast %10 : vector<1x32xf32> to vector<1x1x32xf32>
    %12 = vector.broadcast %11 : vector<1x1x32xf32> to vector<8x8x32xf32>
    %13 = arith.mulf %9, %12 : vector<8x8x32xf32>
    %cst_9 = arith.constant dense<0.000000e+00> : vector<8x8xf32>
    %14 = vector.multi_reduction <add>, %13, %cst_9 [2] : vector<8x8x32xf32> to vector<8x8xf32>
    %15 = vector.shape_cast %14 : vector<8x8xf32> to vector<8x8x1xf32>
    %cst_10 = arith.constant dense<0xFF800000> : vector<8x1xf32>
    %16 = vector.multi_reduction <maximumf>, %15, %cst_10 [1] : vector<8x8x1xf32> to vector<8x1xf32>
    %17 = vector.shape_cast %16 : vector<8x1xf32> to vector<8x1x1xf32>
    %18 = vector.broadcast %17 : vector<8x1x1xf32> to vector<8x8x1xf32>
    %19 = arith.subf %15, %18 : vector<8x8x1xf32>
    %20 = math.exp %19 : vector<8x8x1xf32>
    %cst_11 = arith.constant dense<0.000000e+00> : vector<8x1xf32>
    %21 = vector.multi_reduction <add>, %20, %cst_11 [1] : vector<8x8x1xf32> to vector<8x1xf32>
    %22 = vector.shape_cast %21 : vector<8x1xf32> to vector<8x1x1xf32>
    %23 = tpu.reciprocal %22 {approx = true} : vector<8x1x1xf32> -> vector<8x1x1xf32>
    %24 = vector.broadcast %23 : vector<8x1x1xf32> to vector<8x8x1xf32>
    %25 = arith.mulf %20, %24 : vector<8x8x1xf32>
    %26 = vector.broadcast %25 : vector<8x8x1xf32> to vector<8x8x32xf32>
    %27 = arith.mulf %26, %0 : vector<8x8x32xf32>
    %cst_12 = arith.constant dense<0.000000e+00> : vector<8x32xf32>
    %28 = vector.multi_reduction <add>, %27, %cst_12 [1] : vector<8x8x32xf32> to vector<8x32xf32>
    %c0_13 = arith.constant 0 : index
    %c0_14 = arith.constant 0 : index
    %29 = vector.load %arg5[%c0_13, %c0_14] : memref<8x32xf32, #tpu.memory_space<vmem>>, vector<8x32xf32>
    tpu.vector_store %arg5[%c0_13, %c0_14], %28 {strides = array<i32>} : memref<8x32xf32, #tpu.memory_space<vmem>>, vector<8x32xf32>,
    return
  }
  func.func @transform_0(%arg0: i32) -> (i32, i32, i32) {
    %c0_i32 = arith.constant 0 : i32
    %c0_i32_0 = arith.constant 0 : i32
    %c0_i32_1 = arith.constant 0 : i32
    return %arg0, %c0_i32, %c0_i32_0 : i32, i32, i32
  }
  func.func @transform_1(%arg0: i32) -> (i32, i32) {
    %c0_i32 = arith.constant 0 : i32
    %c0_i32_0 = arith.constant 0 : i32
    %c0_i32_1 = arith.constant 0 : i32
    return %c0_i32, %c0_i32_0 : i32, i32
  }
  func.func @transform_2(%arg0: i32) -> (i32, i32) {
    %c0_i32 = arith.constant 0 : i32
    %c0_i32_0 = arith.constant 0 : i32
    %c0_i32_1 = arith.constant 0 : i32
    return %c0_i32, %c0_i32_0 : i32, i32
  }
  func.func @transform_3(%arg0: i32) -> (i32, i32) {
    %c0_i32 = arith.constant 0 : i32
    %c0_i32_0 = arith.constant 0 : i32
    %c0_i32_1 = arith.constant 0 : i32
    return %c0_i32, %c0_i32_0 : i32, i32
  }
  func.func @transform_4(%arg0: i32) -> (i32, i32) {
    %c0_i32 = arith.constant 0 : i32
    %c0_i32_0 = arith.constant 0 : i32
    return %arg0, %c0_i32 : i32, i32
  }
}

</mosaic_0001>

<bundles_post_ra>
// kernel: tpu_custom_call.1
= control target key start
LH: loop header
LB: loop body
LE: loop exit
PB: predicated region body
PF: predicated region fallthrough
CT: control target
= control target key end

     0   :  { %9 = vsyncpa [#allocation3], 0  ;;  %s1230_s0 = inlined_call_operand.hbm [shape: f32[16,8,32], index: 0, kind: input, shape index: {}]   ;;  %s1231_s1 = inlined_call_operand.hbm [shape: f32[32,32], index: 1, kind: input, shape index: {}]   ;;  %s1232_s2 = inlined_call_operand.vmem [shape: f32[1,32], index: 2, kind: input, shape index: {}]   ;;  %s1233_s3 = inlined_call_operand.vmem [shape: f32[1,32], index: 3, kind: input, shape index: {}]   ;;  %s1234_s4 = inlined_call_operand.hbm [shape: f32[16,32], index: 4, kind: output, shape index: {}]  }
   0x1   :  { %11 = vsyncpa [#allocation3 + $0x1], 0 }
   0x2   :  { %12 = vsyncpa [#allocation6], 0 }
   0x3   :  { %13 = vsyncpa [#allocation4], 0 }
   0x4   :  { %15 = vsyncpa [#allocation4 + $0x1], 0  ;;  %s971_s15 = smov 0   ;;  %s973_s16 = smov 0  }
   0x5   :  { %s975_s17 = smov 0   ;;  %s977_s18 = smov 0  }
   0x6 LB: > { %s992_s19 = sadd.s32 4294967295, %s941_s18   ;;  %s682_s20 = sadd.s32 4294967294, %s941_s18   ;;  %s941_s18 = sphi %s977_s18, %s1244_s18   ;;  %s937_s17 = sphi %s975_s17, %s1243_s17   ;;  %s933_s16 = sphi %s973_s16, %s1242_s16   ;;  %s929_s15 = sphi %s971_s15, %s1241_s15  }
   0x7   : > { %p41_p0 = scmp.ne.s32.totalorder %s933_s16, %s929_s15  ;;  %p42_p1 = scmp.eq.s32.totalorder %s992_s19, 0 }
   0x8   : > { %p128_p2 = scmp.eq.s32.totalorder %s992_s19, 1  ;;  %p134_p3 = scmp.eq.s32.totalorder %s682_s20, 1 }
   0x9   : > { %p1001_p4 = por %p42_p1, %p41_p0  ;;  %p683_p5 = scmp.ge.s32.totalorder %s941_s18, 1 }
   0xa   : > { %p1006_p6 = por %p134_p3, %p41_p0  ;;  %p141_p7 = scmp.lt.s32.totalorder %s941_s18, 3 }
   0xb   : > { %s152_s25 = sshll.u32 %s1231_s1, 4  ;;  %s943_s27 = smov [#allocation5]   ;;  %s153_s25 = int_to_ptr.hbm [resolvable:$true] %s152_s25 }
   0xc   : > { %p1014_p8 = pnand %p683_p5, %p141_p7  ;;  %s154_s28 = sshll.u32 %s943_s27, 4  ;;  %s155_s28 = int_to_ptr.vmem [resolvable:$true] %s154_s28 }
   0xd   : > { %s1024_s29 = sadd.s32 1, %s941_s18   ;;  %s944_s30 = smov 128  }
   0xe   : > { %p726_p9 = pneg %p1014_p8  ;;  %s945_s5 = smov 8  }
   0xf   : > { %s25_s6 = ssub.s32 %s941_s18, %s1024_s29  ;;  %s28_s7 = sadd.s32 1, %s937_s17 }
  0x10   : > { %p727_p10 = pnand %p726_p9, %p42_p1  ;;  %p26_p12 = scmp.eq.s32.totalorder %s25_s6, 0 }
  0x11   : > { %p35_p13 = scmp.ne.s32.totalorder %s937_s17, %s933_s16  ;;  %p36_p0 = scmp.eq.s32.totalorder %s941_s18, 0 }
  0x12   : > { %729 = dma.hbm_to_vmem [thread:$0]  (!%p727_p10), %s153_s25, 512, %s155_s28, [#allocation6], %s944_s30, %s944_s30, %s945_s5  }
  0x13   : > { %s1036_s8 = scalar_select %p26_p12, %s937_s17, %s28_s7  }
  0x14   : > { %p1040_p3 = por %p128_p2, %p35_p13  ;;  %p739_p5 = scmp.lt.s32.totalorder %s941_s18, 2 }
  0x15   : > { %s174_s10 = sand.u32 1, %s937_s17   ;;  %s705_s11 = sshll.u32 %s941_s18, 6 }
  0x16   : > { %p37_p7 = por %p36_p0, %p35_p13  ;;  %s686_s12 = sshll.u32 %s174_s10, 6 }
  0x17   : > { %s183_s20 = scalar_lea.hbm %s1230_s0, %s705_s11  ;;  %s178_s24 = scalar_lea.vmem [#allocation2], %s686_s12 }
  0x18   : > { %s184_s23 = sshll.u32 %s183_s20, 4  ;;  %s186_s25 = sshll.u32 %s178_s24, 4  ;;  %s185_s23 = int_to_ptr.hbm [resolvable:$true] %s184_s23  ;;  %s187_s25 = int_to_ptr.vmem [resolvable:$true] %s186_s25 }
  0x19   : > { %p1050_p9 = pnand %p739_p5, %p37_p7  ;;  %s175_s28 = scalar_lea.sflag [#allocation3], %s174_s10 }
  0x1a   : > { %s841_s6 = sshra.s32 %s185_s23, 4  ;;  %s848_s12 = scalar_lea.hbm %s1230_s0, 128  ;;  %s842_s6 = int_to_ptr.hbm [resolvable:$true] %s841_s6 }
  0x1b   : > { %s843_s7 = scalar_lea.hbm %s842_s6, 64  ;;  %p845_p10 = pneg %p1050_p9 }
  0x1c   : > { %p844_p2 = scmp.ne.s32.totalorder %s842_s6, %s843_s7  ;;  %p849_p0 = scmp.lt.s32.totalorder %s842_s6, %s1230_s0 }
  0x1d   : > { %p850_p5 = scmp.lt.s32.totalorder %s848_s12, %s843_s7 }
  0x1e   : > { %p846_p12 = pnand %p845_p10, %p844_p2 }
  0x1f   : > { %p851_p7 = por %p850_p5, %p849_p0 }
  0x20   : > { %p847_p13 = pneg %p846_p12 }
  0x22   : > { %p852_p11 = pnand %p851_p7, %p847_p13 }
  0x24   : > { %855 = shalt.err (!%p852_p11)
}
  0x25   : > { %733 = dma.hbm_to_vmem [thread:$0]  (!%p1050_p9), %s185_s23, 1024, %s187_s25, %s175_s28, %s944_s30, %s944_s30, %s945_s5  }
  0x26   : > { %198 = sbr.rel (%p1014_p8) target bundleno = 386 (0x182), region = 36  ;;  %s1070_s10 = sand.u32 (!%p1014_p8), 1, %s933_s16  }
  0x27   : > { %s690_s24 = sshll.u32 (!%p1014_p8), %s1070_s10, 6  ;;  %s201_s6 = scalar_lea.sflag (!%p1014_p8), [#allocation3], %s1070_s10 }
  0x28   : > { %s1074_s7 = scalar_lea.vmem (!%p1014_p8), [#allocation2], %s690_s24 }
  0x2b   : > { %916 = dma.done.wait (%p1001_p4), %s201_s6, 1024  }
  0x2c   : > { %918 = vsyncadd (%p1001_p4), %s201_s6, 4294966272 }
  0x2d   : > { %920 = dma.done.wait (%p42_p1), [#allocation6], 512  }
  0x2e   : > { %922 = vsyncadd (%p42_p1), [#allocation6], 4294966784  ;;  %v247_v0 = vld [vmem:[#allocation5 + $0x18] sm:$0xff]  ;;  %v246_v1 = vld [vmem:[#allocation5 + $0x10] sm:$0xff]  ;;  %vm252_vm0 = vcmask 261120   ;;  %vm570_vm1 = vcmask 1041409  }
  0x2f   : > { %289 = vmatpush.msra.mxu0 %v247_v0  ;;  %706 = vmatpush.msra.mxu1 %v247_v0  ;;  %v245_v2 = vld [vmem:[#allocation5 + $0x8] sm:$0xff]  ;;  %v244_v3 = vld [vmem:[#allocation5] sm:$0xff]  ;;  %v1088_v5 = vld [vmem:[%s1074_s7 + $0x10] sm:$0xff]  ;;  %vm572_vm2 = vcmask 1042434   ;;  %vm574_vm3 = vcmask 1043459   ;;  %s692_s23 = sshll.u32 %s1070_s10, 3 }
  0x30   : > { %707 = vmatpush.msra.mxu2 %v247_v0  ;;  %708 = vmatpush.msra.mxu3 %v247_v0  ;;  %v1085_v4 = vld [vmem:[%s1074_s7] sm:$0xff]  ;;  %v1096_v7 = vld [vmem:[%s1074_s7 + $0x30] sm:$0xff]  ;;  %v1105_v8 = vld [vmem:[%s1074_s7 + $0x8] sm:$0xff]  ;;  %s702_s25 = sshll.u32 %s992_s19, 3  ;;  %vm576_vm4 = vcmask 1044484   ;;  %vm578_vm5 = vcmask 1045509  }
  0x31   : > { %290 = vmatpush.msra.mxu0 %v246_v1  ;;  %709 = vmatpush.msra.mxu1 %v246_v1  ;;  %v1091_v6 = vld [vmem:[%s1074_s7 + $0x20] sm:$0xff]  ;;  %v1108_v9 = vld [vmem:[%s1074_s7 + $0x18] sm:$0xff]  ;;  %v1111_v10 = vld [vmem:[%s1074_s7 + $0x28] sm:$0xff]  ;;  %s597_s11 = scalar_lea.hbm %s1234_s4, %s702_s25  ;;  %vm580_vm6 = vcmask 1046534   ;;  %s234_s19 = scalar_lea.vmem [#allocation7], %s692_s23  ;;  %vm582_vm7 = vcmask 1047559  }
  0x32   : > { %710 = vmatpush.msra.mxu2 %v246_v1  ;;  %711 = vmatpush.msra.mxu3 %v246_v1  ;;  %v1116_v11 = vld [vmem:[%s1074_s7 + $0x38] sm:$0xff]  ;;  %v777_v12 = vld [vmem:[%s1232_s2] ss:$0 sm:$0xff]  ;;  %s599_s13 = sshll.u32 %s234_s19, 4  ;;  %s601_s12 = sshll.u32 %s597_s11, 4  ;;  %s600_s13 = int_to_ptr.vmem [resolvable:$true] %s599_s13  ;;  %s602_s12 = int_to_ptr.hbm [resolvable:$true] %s601_s12 }
  0x33   : > { %291 = vmatpush.msra.mxu0 %v245_v2  ;;  %712 = vmatpush.msra.mxu1 %v245_v2  ;;  %v778_v16 = vld [vmem:[%s1233_s3] ss:$0 sm:$0xff]  ;;  %s587_s14 = scalar_lea.sflag [#allocation4], %s1070_s10  ;;  %s885_s20 = sshra.s32 %s602_s12, 4  ;;  %s886_s20 = int_to_ptr.hbm [resolvable:$true] %s885_s20 }
  0x34   : > { %713 = vmatpush.msra.mxu2 %v245_v2  ;;  %714 = vmatpush.msra.mxu3 %v245_v2  ;;  %s887_s24 = scalar_lea.hbm %s886_s20, 8  ;;  %s891_s21 = scalar_lea.hbm %s1234_s4, 16 }
  0x35   : > { %292 = vmatpush.msra.mxu0 %v244_v3  ;;  %715 = vmatpush.msra.mxu1 %v244_v3  ;;  %p888_p1 = scmp.ne.s32.totalorder %s886_s20, %s887_s24  ;;  %p892_p11 = scmp.lt.s32.totalorder %s886_s20, %s1234_s4 }
  0x36   : > { %716 = vmatpush.msra.mxu2 %v244_v3  ;;  %693 = vmatmul.msk.f32.vlgmr.msra.gmra.mxu0 %vm252_vm0, %v1085_v4  ;;  %p893_p9 = scmp.lt.s32.totalorder %s891_s21, %s887_s24 }
  0x37   : > { %695 = vmatmul.msk.f32.vlgmr.msra.gmra.mxu1 %vm252_vm0, %v1088_v5  ;;  %697 = vmatmul.msk.f32.vlgmr.msra.gmra.mxu2 %vm252_vm0, %v1091_v6  ;;  %p889_p4 = pnand %p888_p1, %p1040_p3 }
  0x38   : > { %717 = vmatpush.msra.mxu3 %v244_v3  ;;  %p894_p2 = por %p893_p9, %p892_p11 }
  0x39   : > { %699 = vmatmul.msk.f32.vlgmr.msra.gmra.mxu3 %vm252_vm0, %v1096_v7  ;;  %p890_p8 = pneg %p889_p4 }
  0x3b   : > { %p895_p10 = pnand %p894_p2, %p890_p8 }
  0x3e   : > { %694 = vmatmul.msk.f32.gmra.mxu0 %vm252_vm0, %v1105_v8 }
  0x3f   : > { %696 = vmatmul.msk.f32.gmra.mxu1 %vm252_vm0, %v1108_v9  ;;  %698 = vmatmul.msk.f32.gmra.mxu2 %vm252_vm0, %v1111_v10 }
  0x41   : > { %700 = vmatmul.msk.f32.gmra.mxu3 %vm252_vm0, %v1116_v11 }
  0xb3   : > { %v294_v13 = vpop.f32.mrf.mxu0 }
  0xb4   : > { %v295_v14 = vadd.f32 %v777_v12, %v294_v13  ;;  %v300_v15 = vpop.f32.mrf.mxu1 }
  0xb5   : > { %v301_v17 = vadd.f32 %v777_v12, %v300_v15 }
  0xb6   : > { %v318_v18 = vmax.f32 %v295_v14, 0.0 }
  0xb7   : > { %v320_v19 = vmax.f32 %v301_v17, 0.0 }
  0xb8   : > { %v330_v20 = vmul.f32 %v778_v16, %v318_v18 }
  0xb9   : > { %v332_v21 = vmul.f32 %v778_v16, %v320_v19 }
  0xba   : > { %v306_v22 = vpop.f32.mrf.mxu2  ;;  %v338_v23 = vsel %vm252_vm0, %v330_v20, 0.0 }
  0xbb   : > { %v307_v24 = vadd.f32 %v777_v12, %v306_v22  ;;  %v344_v25 = vsel %vm252_vm0, %v332_v21, 0.0  ;;  %v297_v26 = vpop.f32.mrf.mxu0  ;;  %339 = vadd.xlane.f32.xlu0 %v338_v23 }
  0xbc   : > { %v303_v27 = vpop.f32.mrf.mxu1  ;;  %v312_v28 = vpop.f32.mrf.mxu3  ;;  %345 = vadd.xlane.f32.xlu1 %v344_v25  ;;  %v298_v29 = vadd.f32 %v777_v12, %v297_v26 }
  0xbd   : > { %v322_v30 = vmax.f32 %v307_v24, 0.0  ;;  %v304_v31 = vadd.f32 %v777_v12, %v303_v27  ;;  %v313_v32 = vadd.f32 %v777_v12, %v312_v28 }
  0xbe   : > { %v319_v33 = vmax.f32 %v298_v29, 0.0 }
  0xbf   : > { %v321_v34 = vmax.f32 %v304_v31, 0.0  ;;  %v334_v35 = vmul.f32 %v778_v16, %v322_v30  ;;  %v324_v39 = vmax.f32 %v313_v32, 0.0 }
  0xc0   : > { %v331_v36 = vmul.f32 %v778_v16, %v319_v33 }
  0xc1   : > { %v350_v37 = vsel %vm252_vm0, %v334_v35, 0.0  ;;  %v333_v38 = vmul.f32 %v778_v16, %v321_v34  ;;  %v336_v47 = vmul.f32 %v778_v16, %v324_v39 }
  0xc2   : > { %v309_v40 = vpop.f32.mrf.mxu2  ;;  %351 = vadd.xlane.f32.xlu2 %v350_v37  ;;  %v341_v41 = vsel %vm252_vm0, %v331_v36, 0.0 }
  0xc3   : > { %v310_v42 = vadd.f32 %v777_v12, %v309_v40  ;;  %v347_v43 = vsel %vm252_vm0, %v333_v38, 0.0  ;;  %342 = vadd.xlane.f32.xlu0 %v341_v41  ;;  %v356_v52 = vsel %vm252_vm0, %v336_v47, 0.0 }
  0xc4   : > { %v315_v44 = vpop.f32.mrf.mxu3  ;;  %348 = vadd.xlane.f32.xlu1 %v347_v43 }
  0xc5   : > { %v323_v45 = vmax.f32 %v310_v42, 0.0  ;;  %v316_v46 = vadd.f32 %v777_v12, %v315_v44 }
  0xc7   : > { %v325_v48 = vmax.f32 %v316_v46, 0.0  ;;  %v335_v49 = vmul.f32 %v778_v16, %v323_v45 }
  0xc9   : > { %v353_v50 = vsel %vm252_vm0, %v335_v49, 0.0  ;;  %v337_v51 = vmul.f32 %v778_v16, %v325_v48 }
  0xca   : > { %354 = vadd.xlane.f32.xlu2 %v353_v50 }
  0xcb   : > { %v359_v53 = vsel %vm252_vm0, %v337_v51, 0.0  ;;  %357 = vadd.xlane.f32.xlu0 %v356_v52 }
  0xcc   : > { %360 = vadd.xlane.f32.xlu1 %v359_v53 }
 0x12e   : > { %v340_v54 = vpop.xlane.xlu0 %339 }
 0x12f   : > { %v346_v55 = vpop.xlane.xlu1 %345  ;;  %v362_v56 = vrot.slane %v340_v54, 4 }
 0x130   : > { %v374_v57 = vrot.slane %v346_v55, 4 }
 0x131   : > { %v363_v58 = vmax.f32 %v340_v54, %v362_v56 }
 0x132   : > { %v375_v59 = vmax.f32 %v346_v55, %v374_v57 }
 0x133   : > { %v364_v60 = vrot.slane %v363_v58, 2 }
 0x134   : > { %v376_v61 = vrot.slane %v375_v59, 2 }
 0x135   : > { %v365_v62 = vmax.f32 %v363_v58, %v364_v60  ;;  %v352_v63 = vpop.xlane.xlu2 %351 }
 0x136   : > { %v377_v0 = vmax.f32 %v375_v59, %v376_v61  ;;  %v386_v1 = vrot.slane %v352_v63, 4  ;;  %v343_v2 = vpop.xlane.xlu0 %342 }
 0x137   : > { %v366_v3 = vrot.slane %v365_v62, 1  ;;  %v349_v12 = vpop.xlane.xlu1 %348  ;;  %v368_v13 = vrot.slane %v343_v2, 4 }
 0x138   : > { %v378_v14 = vrot.slane %v377_v0, 1  ;;  %v387_v15 = vmax.f32 %v352_v63, %v386_v1  ;;  %v380_v16 = vrot.slane %v349_v12, 4 }
 0x139   : > { %v367_v17 = vmax.f32 %v365_v62, %v366_v3  ;;  %v369_v18 = vmax.f32 %v343_v2, %v368_v13 }
 0x13a   : > { %v379_v19 = vmax.f32 %v377_v0, %v378_v14  ;;  %v388_v20 = vrot.slane %v387_v15, 2  ;;  %v381_v21 = vmax.f32 %v349_v12, %v380_v16 }
 0x13b   : > { %v410_v22 = vsub.f32 %v340_v54, %v367_v17  ;;  %v370_v23 = vrot.slane %v369_v18, 2 }
 0x13c   : > { %v412_v24 = vsub.f32 %v346_v55, %v379_v19  ;;  %v389_v25 = vmax.f32 %v387_v15, %v388_v20  ;;  %v382_v26 = vrot.slane %v381_v21, 2 }
 0x13d   : > { %v418_v27 = vmul.f32 1.442695, %v410_v22  ;;  %v371_v28 = vmax.f32 %v369_v18, %v370_v23  ;;  %v355_v29 = vpop.xlane.xlu2 %354 }
 0x13e   : > { %v422_v30 = vmul.f32 1.442695, %v412_v24  ;;  %v390_v31 = vrot.slane %v389_v25, 1  ;;  %v383_v32 = vmax.f32 %v381_v21, %v382_v26  ;;  %v392_v33 = vrot.slane %v355_v29, 4  ;;  %v358_v34 = vpop.xlane.xlu0 %357 }
 0x13f   : > { %779 = vpow2.f32 %v418_v27  ;;  %v372_v35 = vrot.slane %v371_v28, 1  ;;  %v361_v36 = vpop.xlane.xlu1 %360  ;;  %v398_v37 = vrot.slane %v358_v34, 4 }
 0x140   : > { %781 = vpow2.f32 %v422_v30  ;;  %v391_v38 = vmax.f32 %v389_v25, %v390_v31  ;;  %v384_v39 = vrot.slane %v383_v32, 1  ;;  %v393_v40 = vmax.f32 %v355_v29, %v392_v33 }
 0x141   : > { %v373_v41 = vmax.f32 %v371_v28, %v372_v35  ;;  %v404_v42 = vrot.slane %v361_v36, 4  ;;  %v399_v43 = vmax.f32 %v358_v34, %v398_v37 }
 0x142   : > { %v414_v44 = vsub.f32 %v352_v63, %v391_v38  ;;  %v385_v45 = vmax.f32 %v383_v32, %v384_v39  ;;  %v394_v46 = vrot.slane %v393_v40, 2 }
 0x143   : > { %v411_v47 = vsub.f32 %v343_v2, %v373_v41  ;;  %v405_v48 = vmax.f32 %v361_v36, %v404_v42  ;;  %v400_v49 = vrot.slane %v399_v43, 2 }
 0x144   : > { %v426_v50 = vmul.f32 1.442695, %v414_v44  ;;  %v413_v51 = vsub.f32 %v349_v12, %v385_v45  ;;  %v395_v52 = vmax.f32 %v393_v40, %v394_v46 }
 0x145   : > { %v1138_v53 = vpop.eup %779  ;;  %v420_v54 = vmul.f32 1.442695, %v411_v47  ;;  %v406_v55 = vrot.slane %v405_v48, 2  ;;  %v401_v56 = vmax.f32 %v399_v43, %v400_v49 }
 0x146   : > { %v1140_v57 = vpop.eup %781  ;;  %v434_v58 = vrot.slane %v1138_v53, 4  ;;  %783 = vpow2.f32 %v426_v50  ;;  %v424_v59 = vmul.f32 1.442695, %v413_v51  ;;  %v396_v60 = vrot.slane %v395_v52, 1 }
 0x147   : > { %v446_v61 = vrot.slane %v1140_v57, 4  ;;  %785 = vpow2.f32 %v420_v54  ;;  %v407_v62 = vmax.f32 %v405_v48, %v406_v55  ;;  %v402_v63 = vrot.slane %v401_v56, 1 }
 0x148   : > { %v435_v0 = vadd.f32 %v1138_v53, %v434_v58  ;;  %787 = vpow2.f32 %v424_v59  ;;  %v397_v1 = vmax.f32 %v395_v52, %v396_v60 }
 0x149   : > { %v447_v2 = vadd.f32 %v1140_v57, %v446_v61  ;;  %v408_v3 = vrot.slane %v407_v62, 1  ;;  %v403_v12 = vmax.f32 %v401_v56, %v402_v63 }
 0x14a   : > { %v436_v13 = vrot.slane %v435_v0, 2  ;;  %v415_v14 = vsub.f32 %v355_v29, %v397_v1 }
 0x14b   : > { %v448_v15 = vrot.slane %v447_v2, 2  ;;  %v409_v16 = vmax.f32 %v407_v62, %v408_v3  ;;  %v416_v17 = vsub.f32 %v358_v34, %v403_v12 }
 0x14c   : > { %v1146_v18 = vpop.eup %783  ;;  %v437_v19 = vadd.f32 %v436_v13, %v435_v0  ;;  %v428_v20 = vmul.f32 1.442695, %v415_v14 }
 0x14d   : > { %v1148_v21 = vpop.eup %785  ;;  %v449_v22 = vadd.f32 %v448_v15, %v447_v2  ;;  %v458_v23 = vrot.slane %v1146_v18, 4  ;;  %v417_v24 = vsub.f32 %v361_v36, %v409_v16  ;;  %v430_v25 = vmul.f32 1.442695, %v416_v17 }
 0x14e   : > { %v1151_v26 = vpop.eup %787  ;;  %v438_v27 = vrot.slane %v437_v19, 1  ;;  %v440_v28 = vrot.slane %v1148_v21, 4  ;;  %789 = vpow2.f32 %v428_v20 }
 0x14f   : > { %v450_v29 = vrot.slane %v449_v22, 1  ;;  %v459_v30 = vadd.f32 %v1146_v18, %v458_v23  ;;  %v452_v31 = vrot.slane %v1151_v26, 4  ;;  %v432_v32 = vmul.f32 1.442695, %v417_v24 }
 0x150   : > { %v439_v33 = vadd.f32 %v438_v27, %v437_v19  ;;  %v441_v34 = vadd.f32 %v1148_v21, %v440_v28  ;;  %791 = vpow2.f32 %v430_v25 }
 0x151   : > { %v451_v35 = vadd.f32 %v450_v29, %v449_v22  ;;  %v460_v37 = vrot.slane %v459_v30, 2  ;;  %v453_v36 = vadd.f32 %v1151_v26, %v452_v31  ;;  %793 = vpow2.f32 %v432_v32 }
 0x152   : > { %795 = vrcp.f32 %v439_v33  ;;  %v442_v38 = vrot.slane %v441_v34, 2 }
 0x153   : > { %797 = vrcp.f32 %v451_v35  ;;  %v461_v39 = vadd.f32 %v460_v37, %v459_v30  ;;  %v454_v40 = vrot.slane %v453_v36, 2 }
 0x154   : > { %v1158_v41 = vpop.eup %789  ;;  %v443_v42 = vadd.f32 %v442_v38, %v441_v34 }
 0x155   : > { %v462_v43 = vrot.slane %v461_v39, 1  ;;  %v455_v44 = vadd.f32 %v454_v40, %v453_v36  ;;  %v464_v45 = vrot.slane %v1158_v41, 4 }
 0x156   : > { %v1161_v46 = vpop.eup %791  ;;  %v444_v47 = vrot.slane %v443_v42, 1 }
 0x157   : > { %v1163_v48 = vpop.eup %793  ;;  %v463_v49 = vadd.f32 %v462_v43, %v461_v39  ;;  %v456_v50 = vrot.slane %v455_v44, 1  ;;  %v465_v51 = vadd.f32 %v1158_v41, %v464_v45  ;;  %v470_v52 = vrot.slane %v1161_v46, 4 }
 0x158   : > { %v796_v54 = vpop.eup %795  ;;  %v445_v55 = vadd.f32 %v444_v47, %v443_v42  ;;  %v476_v56 = vrot.slane %v1163_v48, 4 }
 0x159   : > { %v798_v58 = vpop.eup %797  ;;  %v490_v59 = vmul.f32 %v796_v54, %v1138_v53  ;;  %799 = vrcp.f32 %v463_v49  ;;  %v457_v60 = vadd.f32 %v456_v50, %v455_v44  ;;  %v466_v61 = vrot.slane %v465_v51, 2 }
 0x15a   : > { %v492_v62 = vmul.f32 %v798_v58, %v1140_v57  ;;  %801 = vrcp.f32 %v445_v55  ;;  %v477_v63 = vadd.f32 %v1163_v48, %v476_v56  ;;  %v471_v0 = vadd.f32 %v1161_v46, %v470_v52 }
 0x15b   : > { %v498_v1 = vmul.f32 %v490_v59, %v1085_v4  ;;  %803 = vrcp.f32 %v457_v60  ;;  %v467_v2 = vadd.f32 %v466_v61, %v465_v51 }
 0x15c   : > { %v500_v3 = vmul.f32 %v492_v62, %v1088_v5  ;;  %v478_v12 = vrot.slane %v477_v63, 2  ;;  %v472_v13 = vrot.slane %v471_v0, 2 }
 0x15d   : > { %v506_v53 = vsel %vm252_vm0, %v498_v1, 0.0  ;;  %v468_v14 = vrot.slane %v467_v2, 1 }
 0x15e   : > { %v520_v15 = vsel %vm252_vm0, %v500_v3, 0.0  ;;  %v507_v16 = vrot.slane %v506_v53, 4  ;;  %v479_v57 = vadd.f32 %v478_v12, %v477_v63  ;;  %v473_v17 = vadd.f32 %v472_v13, %v471_v0 }
 0x15f   : > { %v800_v19 = vpop.eup %799  ;;  %v521_v20 = vrot.slane %v520_v15, 4  ;;  %v469_v22 = vadd.f32 %v468_v14, %v467_v2 }
 0x160   : > { %v802_v23 = vpop.eup %801  ;;  %v508_v24 = vadd.f32 %v507_v16, %v506_v53  ;;  %v494_v4 = vmul.f32 %v800_v19, %v1146_v18  ;;  %v480_v25 = vrot.slane %v479_v57, 1  ;;  %v474_v27 = vrot.slane %v473_v17, 1 }
 0x161   : > { %v804_v5 = vpop.eup %803  ;;  %v522_v28 = vadd.f32 %v521_v20, %v520_v15  ;;  %v491_v29 = vmul.f32 %v802_v23, %v1148_v21  ;;  %805 = vrcp.f32 %v469_v22 }
 0x162   : > { %v502_v30 = vmul.f32 %v494_v4, %v1091_v6  ;;  %v493_v31 = vmul.f32 %v804_v5, %v1151_v26  ;;  %v481_v32 = vadd.f32 %v480_v25, %v479_v57  ;;  %v509_v33 = vrot.slane %v508_v24, 2 }
 0x163   : > { %v499_v34 = vmul.f32 %v491_v29, %v1105_v8  ;;  %v475_v35 = vadd.f32 %v474_v27, %v473_v17  ;;  %v523_v36 = vrot.slane %v522_v28, 2 }
 0x164   : > { %v534_v37 = vsel %vm252_vm0, %v502_v30, 0.0  ;;  %v501_v18 = vmul.f32 %v493_v31, %v1108_v9  ;;  %807 = vrcp.f32 %v481_v32  ;;  %v510_v26 = vadd.f32 %v509_v33, %v508_v24 }
 0x165   : > { %v535_v38 = vrot.slane %v534_v37, 4  ;;  %v513_v39 = vsel %vm252_vm0, %v499_v34, 0.0  ;;  %809 = vrcp.f32 %v475_v35  ;;  %v524_v45 = vadd.f32 %v523_v36, %v522_v28 }
 0x166   : > { %v527_v21 = vsel %vm252_vm0, %v501_v18, 0.0  ;;  %v514_v6 = vrot.slane %v513_v39, 4  ;;  %v511_v52 = vrot.slane %v510_v26, 1 }
 0x167   : > { %v806_v40 = vpop.eup %805  ;;  %v528_v42 = vrot.slane %v527_v21, 4  ;;  %v536_v43 = vadd.f32 %v535_v38, %v534_v37  ;;  %v525_v62 = vrot.slane %v524_v45, 1 }
 0x168   : > { %v515_v44 = vadd.f32 %v514_v6, %v513_v39  ;;  %v495_v8 = vmul.f32 %v806_v40, %v1158_v41 }
 0x169   : > { %v529_v47 = vadd.f32 %v528_v42, %v527_v21  ;;  %v537_v56 = vrot.slane %v536_v43, 2 }
 0x16a   : > { %v808_v49 = vpop.eup %807  ;;  %v516_v9 = vrot.slane %v515_v44, 2  ;;  %v503_v50 = vmul.f32 %v495_v8, %v1111_v10  ;;  %v512_v10 = vadd.f32 %v511_v52, %v510_v26 }
 0x16b   : > { %v810_v51 = vpop.eup %809  ;;  %v497_v54 = vmul.f32 %v808_v49, %v1163_v48  ;;  %v530_v55 = vrot.slane %v529_v47, 2  ;;  %v538_v2 = vadd.f32 %v537_v56, %v536_v43 }
 0x16c   : > { %v517_v58 = vadd.f32 %v516_v9, %v515_v44  ;;  %v541_v59 = vsel %vm252_vm0, %v503_v50, 0.0  ;;  %v496_v60 = vmul.f32 %v810_v51, %v1161_v46 }
 0x16d   : > { %v542_v61 = vrot.slane %v541_v59, 4  ;;  %v505_v41 = vmul.f32 %v497_v54, %v1116_v11  ;;  %v531_v63 = vadd.f32 %v530_v55, %v529_v47  ;;  %v526_v11 = vadd.f32 %v525_v62, %v524_v45 }
 0x16e   : > { %v518_v0 = vrot.slane %v517_v58, 1  ;;  %v504_v1 = vmul.f32 %v496_v60, %v1096_v7  ;;  %v539_v7 = vrot.slane %v538_v2, 1 }
 0x16f   : > { %v543_v48 = vadd.f32 %v542_v61, %v541_v59  ;;  %v555_v3 = vsel %vm252_vm0, %v505_v41, 0.0  ;;  %v532_v13 = vrot.slane %v531_v63, 1 }
 0x170   : > { %v519_v12 = vadd.f32 %v518_v0, %v517_v58  ;;  %v548_v46 = vsel %vm252_vm0, %v504_v1, 0.0  ;;  %v556_v53 = vrot.slane %v555_v3, 4  ;;  %v540_v5 = vadd.f32 %v539_v7, %v538_v2 }
 0x171   : > { %v544_v14 = vrot.slane %v543_v48, 2  ;;  %v549_v15 = vrot.slane %v548_v46, 4  ;;  %v533_v22 = vadd.f32 %v532_v13, %v531_v63 }
 0x172   : > { %v557_v16 = vadd.f32 %v556_v53, %v555_v3  ;;  %v571_v57 = vsel %vm570_vm1, %v519_v12, %v512_v10 }
 0x173   : > { %v545_v17 = vadd.f32 %v544_v14, %v543_v48  ;;  %v550_v19 = vadd.f32 %v549_v15, %v548_v46  ;;  %v573_v20 = vsel %vm572_vm2, %v526_v11, %v571_v57 }
 0x174   : > { %v558_v23 = vrot.slane %v557_v16, 2  ;;  %v575_v27 = vsel %vm574_vm3, %v533_v22, %v573_v20 }
 0x175   : > { %v546_v24 = vrot.slane %v545_v17, 1  ;;  %v551_v4 = vrot.slane %v550_v19, 2  ;;  %v577_v32 = vsel %vm576_vm4, %v540_v5, %v575_v27 }
 0x176   : > { %v559_v25 = vadd.f32 %v558_v23, %v557_v16 }
 0x177   : > { %v547_v28 = vadd.f32 %v546_v24, %v545_v17  ;;  %v552_v29 = vadd.f32 %v551_v4, %v550_v19 }
 0x178   : > { %v560_v30 = vrot.slane %v559_v25, 1 }
 0x179   : > { %v553_v31 = vrot.slane %v552_v29, 1  ;;  %v579_v34 = vsel %vm578_vm5, %v547_v28, %v577_v32 }
 0x17a   : > { %v561_v33 = vadd.f32 %v560_v30, %v559_v25 }
 0x17b   : > { %v554_v35 = vadd.f32 %v553_v31, %v552_v29 }
 0x17d   : > { %v581_v37 = vsel %vm580_vm6, %v554_v35, %v579_v34 }
 0x17e   : > { %v583_v18 = vsel %vm582_vm7, %v561_v33, %v581_v37 }
 0x17f   : > { %585 = vst.msk [vmem:[%s234_s19] sm:$0xff] %vm252_vm0, %v583_v18 }
 0x180   : > { %898 = shalt.err (!%p895_p10)
}
 0x181   : > { %724 = dma.vmem_to_hbm [thread:$0]  (%p1040_p3), %s600_s13, 128, %s602_s12, %s587_s14  }
 0x182 PF: > { %s613_s10 = sand.u32 1, %s929_s15   ;;  %p1240_p12 = scmp.ge.s32.totalorder %s941_s18, 2 }
 0x183   : > { %s614_s5 = scalar_lea.sflag [#allocation4], %s613_s10 }
 0x184   : > { %p735_p13 = pnand %p1240_p12, %p1006_p6 }
 0x186   : > { %p736_p0 = pneg %p735_p13 }
 0x188   : > { %924 = dma.done.wait (%p736_p0), %s614_s5, 128  }
 0x189   : > { %926 = vsyncadd (%p736_p0), %s614_s5, 4294967168  ;;  %p18_p5 = scmp.ge.s32.totalorder %s1024_s29, 4   ;;  %s1241_s15 = smov %s933_s16 }
 0x18a   : > { %s1242_s16 = smov %s937_s17  ;;  %s1243_s17 = smov %s1036_s8 }
 0x18b   : > { %s1244_s18 = smov %s1024_s29  ;;  %20 = sbr.rel (!%p18_p5) target bundleno = 6 (0x6), region = 85 }
 0x190   :  { %620 = vsyncpa [#allocation3], 1 }
 0x191   :  { %622 = vsyncpa [#allocation3 + $0x1], 1 }
 0x192   :  { %623 = vsyncpa [#allocation6], 1 }
 0x193   :  { %624 = vsyncpa [#allocation4], 1 }
 0x194   :  { %626 = vsyncpa [#allocation4 + $0x1], 1 }

</bundles_post_ra>
